<compile_context>
chip_gen: v5e
topology: v5e:2x2
jax: 0.10.0
libtpu: 0.0.40
codegen_flags: <defaults>
</compile_context>

<pallas_src>
import functools

import jax
import jax.numpy as jnp
import numpy as np
from jax import lax
from jax.experimental import pallas as pl
from jax.experimental.pallas import tpu as pltpu


# --------------------------------------------------------------------------
# Generic tiled linear kernel:  y = x @ W^T + b   (weights pre-transposed)
# --------------------------------------------------------------------------

def _linear_kernel(x_ref, wt_ref, b_ref, o_ref):
    y = jnp.dot(x_ref[...], wt_ref[...], preferred_element_type=jnp.float32)
    o_ref[...] = (y + b_ref[...]).astype(o_ref.dtype)


def linear(x2d, wt, b2d, *, tile_m=512):
    """x2d: (M, K); wt: (K, N) (already transposed); b2d: (1, N) -> (M, N)."""
    M, K = x2d.shape
    N = wt.shape[1]
    tm = min(tile_m, M)
    return pl.pallas_call(
        _linear_kernel,
        grid=(pl.cdiv(M, tm),),
        in_specs=[
            pl.BlockSpec((tm, K), lambda i: (i, 0)),
            pl.BlockSpec((K, N), lambda i: (0, 0)),
            pl.BlockSpec((1, N), lambda i: (0, 0)),
        ],
        out_specs=pl.BlockSpec((tm, N), lambda i: (i, 0)),
        out_shape=jax.ShapeDtypeStruct((M, N), x2d.dtype),
        compiler_params=pltpu.CompilerParams(dimension_semantics=("parallel",)),
    )(x2d, wt, b2d)


# --------------------------------------------------------------------------
# Fused decoder stack kernel (all conv layers, one batch element per grid step)
# --------------------------------------------------------------------------

def _decoder_stack_kernel(ce_ref, pe_ref, ep_ref, wconv_ref, bconv_ref, be_ref,
                          ce_out_ref, attn_out_ref,
                          *, num_layers, ksize, pad_val, scale):
    # ce_ref:    (T, H)        conv_embedding (time-major, f32)
    # pe_ref:    (S, H)        projected_encoder_conv (embed_conv @ We^T + be), bf16
    # ep_ref:    (S, H)        encoder_output @ We^T (no bias), bf16
    # wconv_ref: (L, K*H, 2H)  stacked im2col conv weights, bf16
    # bconv_ref: (L, 1, 2H)    conv biases, f32
    # be_ref:    (1, H)        embedding_projection bias, f32
    T, H = ce_ref.shape
    ce = ce_ref[...]                      # f32 (T, H)
    pe = pe_ref[...]                      # bf16 (S, H)
    ep = ep_ref[...]                      # bf16 (S, H)
    be = be_ref[...]                      # f32 (1, H)

    attn = None
    for l in range(num_layers):           # static unroll; ce stays resident
        w_l = wconv_ref[l]                # (K*H, 2H) bf16
        b_l = bconv_ref[l]                # (1, 2H)  f32

        # causal left padding with trg_pad_idx along time
        pad = jnp.full((ksize - 1, H), pad_val, jnp.float32)
        padded = jnp.concatenate([pad, ce], axis=0)               # (T+K-1, H)

        # im2col: column block k holds padded[t+k, :]  -> (T, K*H)
        im2col = jnp.concatenate(
            [padded[k:k + T, :] for k in range(ksize)], axis=1)

        # Conv1d as one MXU matmul, f32 accumulation
        y = jnp.dot(im2col.astype(jnp.bfloat16), w_l,
                    preferred_element_type=jnp.float32) + b_l      # (T, 2H)

        # GLU along channels (lane split at the H=128 boundary)
        x = y[:, :H] * jax.nn.sigmoid(y[:, H:])                    # (T, H) f32
        xb = x.astype(jnp.bfloat16)

        # attention scores (torch: proj_enc @ x, softmax over the time axis)
        scores = lax.dot_general(xb, pe, (((1,), (1,)), ((), ())),
                                 preferred_element_type=jnp.float32)  # (T, S)
        scores = scores - jnp.max(scores, axis=0, keepdims=True)
        esc = jnp.exp(scores)
        inv = pl.reciprocal(jnp.sum(esc, axis=0, keepdims=True), approx=True)
        attn_w = esc * inv                                          # (T, S)

        # attention = attn_w @ (enc_out @ We^T) + be   (enc projection hoisted)
        attn = jnp.dot(attn_w.astype(jnp.bfloat16), ep,
                       preferred_element_type=jnp.float32) + be     # (T, H)

        ce = (x + attn + ce) * scale

    ce_out_ref[...] = ce.astype(ce_out_ref.dtype)
    attn_out_ref[...] = attn.astype(attn_out_ref.dtype)   # last layer only


def decoder_stack(ce_bth, proj_enc, enc_proj, wconv, bconv, emb_b2,
                  *, num_layers, ksize, pad_val, scale):
    B, T, H = ce_bth.shape
    S = proj_enc.shape[1]
    kern = functools.partial(_decoder_stack_kernel, num_layers=num_layers,
                             ksize=ksize, pad_val=pad_val, scale=scale)
    return pl.pallas_call(
        kern,
        grid=(B,),
        in_specs=[
            pl.BlockSpec((None, T, H), lambda b: (b, 0, 0)),               # ce
            pl.BlockSpec((None, S, H), lambda b: (b, 0, 0)),               # proj_enc
            pl.BlockSpec((None, S, H), lambda b: (b, 0, 0)),               # enc_proj
            pl.BlockSpec((num_layers, ksize * H, 2 * H), lambda b: (0, 0, 0)),
            pl.BlockSpec((num_layers, 1, 2 * H), lambda b: (0, 0, 0)),
            pl.BlockSpec((1, H), lambda b: (0, 0)),
        ],
        out_specs=(
            pl.BlockSpec((None, T, H), lambda b: (b, 0, 0)),
            pl.BlockSpec((None, T, H), lambda b: (b, 0, 0)),
        ),
        out_shape=(
            jax.ShapeDtypeStruct((B, T, H), jnp.float32),
            jax.ShapeDtypeStruct((B, T, H), jnp.float32),
        ),
        compiler_params=pltpu.CompilerParams(dimension_semantics=("parallel",)),
    )(ce_bth, proj_enc, enc_proj, wconv, bconv, emb_b2)


# --------------------------------------------------------------------------
# Parameter init (deterministic, PyTorch-like fan-in scaling)
# --------------------------------------------------------------------------

def init_params(key, out_dim, ksize, num_layers, hidden_dim, emb_dim):
    keys = jax.random.split(key, 8 + num_layers)

    def lin(k, out_f, in_f):
        kw, kb = jax.random.split(k)
        lim = 1.0 / np.sqrt(in_f)
        w = jax.random.uniform(kw, (out_f, in_f), jnp.float32, -lim, lim)
        b = jax.random.uniform(kb, (out_f,), jnp.float32, -lim, lim)
        return w, b

    params = {
        "word_emb": jax.random.normal(keys[0], (out_dim, emb_dim), jnp.float32),
        "pos_emb": jax.random.normal(keys[1], (hidden_dim, emb_dim), jnp.float32),
        "emb_proj": lin(keys[2], hidden_dim, emb_dim),     # embedding_projection (E -> H)
        "conv_proj": lin(keys[3], emb_dim, hidden_dim),    # convolution_projection (H -> E)
        "fc_out": lin(keys[4], out_dim, emb_dim),          # fc_out (E -> out_dim)
    }
    convs = []
    for i in range(num_layers):
        kw, kb = jax.random.split(keys[5 + i])
        lim = 1.0 / np.sqrt(hidden_dim * ksize)
        w = jax.random.uniform(kw, (2 * hidden_dim, hidden_dim, ksize),
                               jnp.float32, -lim, lim)
        b = jax.random.uniform(kb, (2 * hidden_dim,), jnp.float32, -lim, lim)
        convs.append((w, b))
    params["convs"] = convs
    return params


# --------------------------------------------------------------------------
# Forward pass (mirrors Decoder.forward)
# --------------------------------------------------------------------------

def decoder_forward(params, target, embed_conv, encoder_output,
                    previous_embedded_target, *, trg_pad_idx, ksize,
                    hidden_dim, emb_dim, out_dim):
    # NOTE: previous_embedded_target is an argument of the torch forward but is
    # never used by it; we accept and ignore it for signature parity.
    del previous_embedded_target
    B, T = target.shape
    S = embed_conv.shape[1]
    L = len(params["convs"])
    scale = float(np.sqrt(0.5))

    # word + position embeddings (tiny gathers -> plain JAX glue)
    word_e = jnp.take(params["word_emb"], target, axis=0)             # (B, T, E)
    pos_e = jnp.take(params["pos_emb"], jnp.arange(T), axis=0)[None]  # (1, T, E)
    embedding = word_e + pos_e
    # TODO(synk): nn.Dropout(p=0.25) is identity at inference; no stochastic dropout applied.

    emb_w, emb_b = params["emb_proj"]
    emb_wT = jnp.transpose(emb_w)                # (E, H), transposed once
    emb_b2 = emb_b.reshape(1, -1)                # (1, H)
    zero_b = jnp.zeros((1, hidden_dim), jnp.float32)

    # conv_embedding kept time-major (B, T, H): no permutes needed around kernel
    ce = linear(embedding.reshape(B * T, emb_dim), emb_wT, emb_b2)
    ce = ce.reshape(B, T, hidden_dim)

    # projected_encoder_conv (loop-invariant, with bias)
    proj_enc = linear(embed_conv.reshape(B * S, emb_dim), emb_wT, emb_b2)
    proj_enc = proj_enc.reshape(B, S, hidden_dim)

    # hoisted encoder projection: encoder_output @ We^T (bias added in-kernel)
    enc_proj = linear(encoder_output.reshape(B * S, emb_dim), emb_wT, zero_b)
    enc_proj = enc_proj.reshape(B, S, hidden_dim)

    # stack + pre-transpose conv weights once: wconv[l, k*H + c, o] = W_l[o, c, k]
    wconv = jnp.stack(
        [jnp.transpose(w, (2, 1, 0)).reshape(ksize * hidden_dim, 2 * hidden_dim)
         for w, _ in params["convs"]], axis=0).astype(jnp.bfloat16)
    bconv = jnp.stack([b.reshape(1, -1) for _, b in params["convs"]], axis=0)

    ce_out, attn_out = decoder_stack(
        ce, proj_enc.astype(jnp.bfloat16), enc_proj.astype(jnp.bfloat16),
        wconv, bconv, emb_b2,
        num_layers=L, ksize=ksize, pad_val=float(trg_pad_idx), scale=scale)

    # final projections (already time-major, no permute needed)
    cp_w, cp_b = params["conv_proj"]
    ce2 = linear(ce_out.reshape(B * T, hidden_dim),
                 jnp.transpose(cp_w), cp_b.reshape(1, -1))            # (B*T, E)
    fo_w, fo_b = params["fc_out"]
    out = linear(ce2, jnp.transpose(fo_w), fo_b.reshape(1, -1))
    out = out.reshape(B, T, out_dim)

    attention = jnp.transpose(attn_out, (0, 2, 1))                    # (B, H, T)
    return out, attention


# --------------------------------------------------------------------------
# Pure-JAX f32 reference (for correctness check)
# --------------------------------------------------------------------------

def _ref_forward(params, target, embed_conv, encoder_output, *, trg_pad_idx,
                 ksize, hidden_dim, emb_dim, out_dim):
    B, T = target.shape
    scale = np.sqrt(0.5)
    word_e = params["word_emb"][target]
    pos_e = params["pos_emb"][jnp.arange(T)][None]
    embedding = word_e + pos_e
    emb_w, emb_b = params["emb_proj"]
    ce = jnp.transpose(embedding @ emb_w.T + emb_b, (0, 2, 1))        # (B, H, T)
    proj_enc = embed_conv @ emb_w.T + emb_b                           # (B, S, H)
    attn_t = None
    for conv_w, conv_b in params["convs"]:
        pad = jnp.full((B, hidden_dim, ksize - 1), float(trg_pad_idx), jnp.float32)
        padded = jnp.concatenate([pad, ce], axis=2)
        x = jnp.zeros((B, 2 * hidden_dim, T), jnp.float32)
        for k in range(ksize):
            x = x + jnp.einsum('oc,bct->bot', conv_w[:, :, k], padded[:, :, k:k + T])
        x = x + conv_b[None, :, None]
        x = x[:, :hidden_dim] * jax.nn.sigmoid(x[:, hidden_dim:])
        scores = jnp.einsum('bsh,bht->bst', proj_enc, x)
        attn_w = jnp.transpose(jax.nn.softmax(scores, axis=2), (0, 2, 1))
        attn = jnp.einsum('bts,bse->bte', attn_w, encoder_output)
        attn_t = jnp.transpose(attn @ emb_w.T + emb_b, (0, 2, 1))
        ce = (x + attn_t + ce) * scale
    ce = jnp.transpose(ce, (0, 2, 1))
    cp_w, cp_b = params["conv_proj"]
    ce = ce @ cp_w.T + cp_b
    fo_w, fo_b = params["fc_out"]
    return ce @ fo_w.T + fo_b, attn_t


# --------------------------------------------------------------------------

if __name__ == "__main__":
    OUT_DIM, KSIZE, NUM_LAYERS = 4, 5, 2
    HIDDEN, EMB = 128, 128
    B, T, S = 2, 8, 8
    TRG_PAD_IDX = 0

    key = jax.random.PRNGKey(0)
    kp, kt, ke, ko, kprev = jax.random.split(key, 5)
    params = init_params(kp, OUT_DIM, KSIZE, NUM_LAYERS, HIDDEN, EMB)

    target = jax.random.randint(kt, (B, T), 0, OUT_DIM)                        # (B, T) int
    embed_conv = jax.random.normal(ke, (B, S, EMB), jnp.float32)               # (B, S, E)
    encoder_output = jax.random.normal(ko, (B, S, EMB), jnp.float32)           # (B, S, E)
    previous_embedded_target = jax.random.normal(kprev, (B, T, EMB), jnp.float32)  # unused

    out, attention = decoder_forward(
        params, target, embed_conv, encoder_output, previous_embedded_target,
        trg_pad_idx=TRG_PAD_IDX, ksize=KSIZE, hidden_dim=HIDDEN,
        emb_dim=EMB, out_dim=OUT_DIM)
    jax.block_until_ready((out, attention))

    ref_out, ref_attn = _ref_forward(
        params, target, embed_conv, encoder_output,
        trg_pad_idx=TRG_PAD_IDX, ksize=KSIZE, hidden_dim=HIDDEN,
        emb_dim=EMB, out_dim=OUT_DIM)

    assert out.shape == (B, T, OUT_DIM), out.shape
    assert attention.shape == (B, HIDDEN, T), attention.shape
    np.testing.assert_allclose(np.asarray(out), np.asarray(ref_out),
                               rtol=2e-2, atol=2e-2)
    np.testing.assert_allclose(np.asarray(attention), np.asarray(ref_attn),
                               rtol=2e-2, atol=2e-2)
    print("KERNEL_OK")
</pallas_src>

<mosaic_0001>
module attributes {stable_mosaic.version = 11 : i64} {
  func.func @_linear_kernel(%arg0: i32, %arg1: memref<16x128xf32, #tpu.memory_space<vmem>>, %arg2: memref<128x128xf32, #tpu.memory_space<vmem>>, %arg3: memref<1x128xf32, #tpu.memory_space<vmem>>, %arg4: memref<16x128xf32, #tpu.memory_space<vmem>>) attributes {dimension_semantics = [#tpu.dimension_semantics<parallel>], iteration_bounds = array<i64: 1>, scalar_prefetch = 0 : i64, scratch_operands = 0 : i64, tpu.core_type = #tpu.core_type<tc>, window_params = [{transform_indices = @transform_0, window_bounds = array<i64: 16, 128>}, {pipeline_mode = #tpu.pipeline_mode<synchronous>, transform_indices = @transform_1, window_bounds = array<i64: 128, 128>}, {pipeline_mode = #tpu.pipeline_mode<synchronous>, transform_indices = @transform_2, window_bounds = array<i64: 1, 128>}, {transform_indices = @transform_3, window_bounds = array<i64: 16, 128>}]} {
    %c0 = arith.constant 0 : index
    %c0_0 = arith.constant 0 : index
    %0 = vector.load %arg1[%c0, %c0_0] : memref<16x128xf32, #tpu.memory_space<vmem>>, vector<16x128xf32>
    %c0_1 = arith.constant 0 : index
    %c0_2 = arith.constant 0 : index
    %1 = vector.load %arg2[%c0_1, %c0_2] : memref<128x128xf32, #tpu.memory_space<vmem>>, vector<128x128xf32>
    %cst = arith.constant dense<0.000000e+00> : vector<16x128xf32>
    %2 = tpu.matmul %0, %1, %cst {dimension_numbers = #tpu.dot_dimension_numbers<[1], [0], [0], [1], [0, 0, 1, 1], [], []>} : vector<16x128xf32>, vector<128x128xf32>, vector<16x128xf32> -> vector<16x128xf32>
    %c0_3 = arith.constant 0 : index
    %c0_4 = arith.constant 0 : index
    %3 = vector.load %arg3[%c0_3, %c0_4] : memref<1x128xf32, #tpu.memory_space<vmem>>, vector<1x128xf32>
    %4 = vector.broadcast %3 : vector<1x128xf32> to vector<16x128xf32>
    %5 = arith.addf %2, %4 : vector<16x128xf32>
    %c0_5 = arith.constant 0 : index
    %c0_6 = arith.constant 0 : index
    %6 = vector.load %arg4[%c0_5, %c0_6] : memref<16x128xf32, #tpu.memory_space<vmem>>, vector<16x128xf32>
    tpu.vector_store %arg4[%c0_5, %c0_6], %5 {strides = array<i32>} : memref<16x128xf32, #tpu.memory_space<vmem>>, vector<16x128xf32>,
    return
  }
  func.func @transform_0(%arg0: i32) -> (i32, i32) {
    %c0_i32 = arith.constant 0 : i32
    %c0_i32_0 = arith.constant 0 : i32
    return %arg0, %c0_i32 : i32, i32
  }
  func.func @transform_1(%arg0: i32) -> (i32, i32) {
    %c0_i32 = arith.constant 0 : i32
    %c0_i32_0 = arith.constant 0 : i32
    %c0_i32_1 = arith.constant 0 : i32
    return %c0_i32, %c0_i32_0 : i32, i32
  }
  func.func @transform_2(%arg0: i32) -> (i32, i32) {
    %c0_i32 = arith.constant 0 : i32
    %c0_i32_0 = arith.constant 0 : i32
    %c0_i32_1 = arith.constant 0 : i32
    return %c0_i32, %c0_i32_0 : i32, i32
  }
  func.func @transform_3(%arg0: i32) -> (i32, i32) {
    %c0_i32 = arith.constant 0 : i32
    %c0_i32_0 = arith.constant 0 : i32
    return %arg0, %c0_i32 : i32, i32
  }
}

</mosaic_0001>

<bundles_post_ra>
// kernel: tpu_custom_call.1
= control target key start
LH: loop header
LB: loop body
LE: loop exit
PB: predicated region body
PF: predicated region fallthrough
CT: control target
= control target key end

     0   :  { %8 = vsyncpa [#allocation3], 0  ;;  %s260_s0 = inlined_call_operand.hbm [shape: f32[16,128], index: 0, kind: input, shape index: {}]   ;;  %s261_s1 = inlined_call_operand.hbm [shape: f32[128,128], index: 1, kind: input, shape index: {}]   ;;  %s262_s2 = inlined_call_operand.vmem [shape: f32[1,128], index: 2, kind: input, shape index: {}]   ;;  %s263_s3 = inlined_call_operand.hbm [shape: f32[16,128], index: 3, kind: output, shape index: {}]  }
   0x1   :  { %9 = vsyncpa [#allocation6], 0 }
   0x2   :  { %10 = vsyncpa [#allocation4], 0  ;;  %s15_s14 = sshll.u32 %s260_s0, 4  ;;  %s214_s15 = smov [#allocation2]   ;;  %s16_s14 = int_to_ptr.hbm [resolvable:$true] %s15_s14 }
   0x3   :  { %s17_s16 = sshll.u32 %s214_s15, 4  ;;  %s28_s19 = sshll.u32 %s261_s1, 4  ;;  %s18_s16 = int_to_ptr.vmem [resolvable:$true] %s17_s16  ;;  %s29_s19 = int_to_ptr.hbm [resolvable:$true] %s28_s19 }
   0x4   :  { %s215_s20 = smov 128   ;;  %s216_s21 = smov 8  }
   0x5   :  { %23 = dma.hbm_to_vmem [thread:$0]  %s16_s14, 256, %s18_s16, [#allocation3], %s215_s20, %s215_s20, %s216_s21  }
   0x6   :  { %s217_s22 = smov [#allocation5]  }
   0x7   :  { %s30_s23 = sshll.u32 %s217_s22, 4  ;;  %s31_s23 = int_to_ptr.vmem [resolvable:$true] %s30_s23 }
   0x8   :  { %36 = dma.hbm_to_vmem [thread:$0]  %s29_s19, 2048, %s31_s23, [#allocation6], %s215_s20, %s215_s20, %s216_s21  }
   0x9   :  { %208 = dma.done.wait [#allocation3], 256  }
   0xa   :  { %209 = vsyncadd [#allocation3], 4294967040 }
   0xb   :  { %210 = dma.done.wait [#allocation6], 2048  }
   0xc   :  { %211 = vsyncadd [#allocation6], 4294965248  ;;  %v64_v0 = vld [vmem:[#allocation5 + $0x78] sm:$0xff]  ;;  %v63_v1 = vld [vmem:[#allocation5 + $0x70] sm:$0xff]  ;;  %s218_s24 = smov [#allocation7]   ;;  %s100_s28 = sshll.u32 %s263_s3, 4  ;;  %s101_s28 = int_to_ptr.hbm [resolvable:$true] %s100_s28 }
   0xd   :  { %69 = vmatpush.msra.mxu0 %v64_v0  ;;  %114 = vmatpush.msra.mxu1 %v64_v0  ;;  %v62_v2 = vld [vmem:[#allocation5 + $0x68] sm:$0xff]  ;;  %v61_v3 = vld [vmem:[#allocation5 + $0x60] sm:$0xff]  ;;  %v60_v4 = vld [vmem:[#allocation5 + $0x58] sm:$0xff]  ;;  %s98_s25 = sshll.u32 %s218_s24, 4  ;;  %s99_s25 = int_to_ptr.vmem [resolvable:$true] %s98_s25 }
   0xe   :  { %v59_v5 = vld [vmem:[#allocation5 + $0x50] sm:$0xff]  ;;  %v58_v6 = vld [vmem:[#allocation5 + $0x48] sm:$0xff]  ;;  %v57_v7 = vld [vmem:[#allocation5 + $0x40] sm:$0xff] }
   0xf   :  { %70 = vmatpush.msra.mxu0 %v63_v1  ;;  %115 = vmatpush.msra.mxu1 %v63_v1  ;;  %v56_v8 = vld [vmem:[#allocation5 + $0x38] sm:$0xff]  ;;  %v55_v9 = vld [vmem:[#allocation5 + $0x30] sm:$0xff]  ;;  %v54_v10 = vld [vmem:[#allocation5 + $0x28] sm:$0xff] }
  0x10   :  { %v53_v11 = vld [vmem:[#allocation5 + $0x20] sm:$0xff]  ;;  %v52_v12 = vld [vmem:[#allocation5 + $0x18] sm:$0xff]  ;;  %v51_v13 = vld [vmem:[#allocation5 + $0x10] sm:$0xff] }
  0x11   :  { %71 = vmatpush.msra.mxu0 %v62_v2  ;;  %116 = vmatpush.msra.mxu1 %v62_v2  ;;  %v50_v14 = vld [vmem:[#allocation5 + $0x8] sm:$0xff]  ;;  %v49_v15 = vld [vmem:[#allocation5] sm:$0xff]  ;;  %v47_v16 = vld [vmem:[#allocation2] sm:$0xff] }
  0x12   :  { %v48_v17 = vld [vmem:[#allocation2 + $0x8] sm:$0xff]  ;;  %v135_v18 = vld [vmem:[%s262_s2] ss:$0 sm:$0xff] }
  0x13   :  { %72 = vmatpush.msra.mxu0 %v61_v3  ;;  %117 = vmatpush.msra.mxu1 %v61_v3 }
  0x15   :  { %73 = vmatpush.msra.mxu0 %v60_v4  ;;  %118 = vmatpush.msra.mxu1 %v60_v4 }
  0x17   :  { %74 = vmatpush.msra.mxu0 %v59_v5  ;;  %119 = vmatpush.msra.mxu1 %v59_v5 }
  0x19   :  { %75 = vmatpush.msra.mxu0 %v58_v6  ;;  %120 = vmatpush.msra.mxu1 %v58_v6 }
  0x1b   :  { %76 = vmatpush.msra.mxu0 %v57_v7  ;;  %121 = vmatpush.msra.mxu1 %v57_v7 }
  0x1d   :  { %77 = vmatpush.msra.mxu0 %v56_v8  ;;  %122 = vmatpush.msra.mxu1 %v56_v8 }
  0x1f   :  { %78 = vmatpush.msra.mxu0 %v55_v9  ;;  %123 = vmatpush.msra.mxu1 %v55_v9 }
  0x21   :  { %79 = vmatpush.msra.mxu0 %v54_v10  ;;  %124 = vmatpush.msra.mxu1 %v54_v10 }
  0x23   :  { %80 = vmatpush.msra.mxu0 %v53_v11  ;;  %125 = vmatpush.msra.mxu1 %v53_v11 }
  0x25   :  { %81 = vmatpush.msra.mxu0 %v52_v12  ;;  %126 = vmatpush.msra.mxu1 %v52_v12 }
  0x27   :  { %82 = vmatpush.msra.mxu0 %v51_v13  ;;  %127 = vmatpush.msra.mxu1 %v51_v13 }
  0x29   :  { %83 = vmatpush.msra.mxu0 %v50_v14  ;;  %128 = vmatpush.msra.mxu1 %v50_v14 }
  0x2b   :  { %84 = vmatpush.msra.mxu0 %v49_v15  ;;  %129 = vmatpush.msra.mxu1 %v49_v15 }
  0x2c   :  { %85 = vmatmul.f32.vlgmr.msra.gmra.mxu0 %v47_v16  ;;  %88 = vmatmul.f32.vlgmr.msra.gmra.mxu1 %v48_v17 }
  0xa9   :  { %v86_v19 = vpop.f32.mrf.mxu0  ;;  %v89_v20 = vpop.f32.mrf.mxu1 }
  0xaa   :  { %v87_v21 = vadd.f32 %v135_v18, %v86_v19  ;;  %v90_v22 = vadd.f32 %v135_v18, %v89_v20 }
  0xac   :  { %92 = vst [vmem:[#allocation7] sm:$0xff] %v87_v21 }
  0xad   :  { %93 = vst [vmem:[#allocation7 + $0x8] sm:$0xff] %v90_v22 }
  0xae   :  { %106 = dma.vmem_to_hbm [thread:$0]  %s99_s25, 256, %s101_s28, [#allocation4], %s215_s20, %s215_s20, %s216_s21  }
  0xaf   :  { %212 = dma.done.wait [#allocation4], 256  }
  0xb0   :  { %213 = vsyncadd [#allocation4], 4294967040 }
  0xb1   :  { %111 = vsyncpa [#allocation3], 1 }
  0xb2   :  { %112 = vsyncpa [#allocation6], 1 }
  0xb3   :  { %113 = vsyncpa [#allocation4], 1 }

</bundles_post_ra>
